<compile_context>
chip_gen: v7x
topology: tpu7x:2x2x1
jax: 0.10.0
libtpu: 0.0.40
codegen_flags: <defaults>
</compile_context>

<pallas_src>
import functools

import numpy as np
import jax
import jax.numpy as jnp
from jax.experimental import pallas as pl
from jax.experimental.pallas import tpu as pltpu


# ------------------------------- kernel ------------------------------------ #

def residual_block_down_kernel(x_ref, g1_ref, b1_ref, g2_ref, b2_ref,
                               w1_ref, w2c_ref, bout_ref, mask_ref, seg_ref,
                               o_ref, *, wc, cin, inv_count, eps):
    """Whole ResidualBlock('down') for one lane-packed batch chunk.

    x_ref   : (1, 4*Cin, L)        space-to-depth input; L = Nc*Hc*Wc lanes
                                    (the batch chunk folded onto the lane axis)
    g*_ref  : (4*Cin, L)           LayerNorm affine params, tiled over samples
    w1_ref  : (4*Cin, 9*4*Cin)     conv_1 as an s2d im2col matrix (transposed)
    w2c_ref : (Cout, 9*4*Cin+Cin)  conv_2 (2x2 mean pool folded in) with the
                                    1x1 shortcut conv appended as extra columns
    bout_ref: (Cout, 1)            b2 + b_shortcut
    mask_ref: (9, L)               per-tap conv boundary masks (host-built)
    seg_ref : (L, L)               block-diagonal per-sample segment matrix
    o_ref   : (1, Cout, L)
    """
    x = x_ref[0]                                            # (4*Cin, L)
    L = x.shape[1]
    seg = seg_ref[...]
    masks = [mask_ref[t:t + 1, :] for t in range(9)]        # hoisted, reused twice

    def layer_norm_relu(h, g, b):
        # One-pass, per-sample (segmented) LayerNorm over (C, H, W) + ReLU.
        s1 = jnp.sum(h, axis=0, keepdims=True)              # (1, L)  sum_c x
        s2 = jnp.sum(h * h, axis=0, keepdims=True)          # (1, L)  sum_c x^2
        ssum = jnp.dot(s1, seg, preferred_element_type=jnp.float32)
        ssq = jnp.dot(s2, seg, preferred_element_type=jnp.float32)
        m = ssum * inv_count
        v = ssq * inv_count - m * m
        y = (h - m) * jax.lax.rsqrt(v + eps) * g + b
        return jnp.maximum(y, 0.0)

    def im2col_3x3(h):
        # h: (Cs, L) -> list of 9 (Cs, L) taps. Tap t = (dh+1)*3 + (dw+1) holds
        # h shifted by (dh, dw) on the coarse grid, zeroed outside the image
        # (== zero padding of the full-res 3x3 conv). Samples never leak into
        # each other: any lane whose shift would cross a sample boundary is
        # out-of-image on the coarse grid and hence masked.
        cols = []
        t = 0
        for dh in (-1, 0, 1):
            for dw in (-1, 0, 1):
                off = dh * wc + dw
                if off == 0:
                    cols.append(h)
                else:
                    shifted = pltpu.roll(h, (-off) % L, axis=1)
                    cols.append(shifted * masks[t])
                t += 1
        return cols

    # bn1 (LayerNorm) + relu1 + conv_1 (3x3, no bias): one 288-deep matmul.
    y1 = layer_norm_relu(x, g1_ref[...], b1_ref[...])
    h1 = jnp.dot(w1_ref[...], jnp.concatenate(im2col_3x3(y1), axis=0),
                 preferred_element_type=jnp.float32)        # (4*Cin, L)

    # bn2 + relu2 + conv_2 (3x3, 2x2 mean pool folded into its weights) fused
    # with the 1x1 MeanPoolConv shortcut: ONE (Cout, 288+Cin)-deep matmul.
    y2 = layer_norm_relu(h1, g2_ref[...], b2_ref[...])
    xpool = 0.25 * (x[0 * cin:1 * cin] + x[1 * cin:2 * cin]
                    + x[2 * cin:3 * cin] + x[3 * cin:4 * cin])     # (Cin, L)
    k2 = jnp.concatenate(im2col_3x3(y2) + [xpool], axis=0)  # (9*4*Cin+Cin, L)
    out = jnp.dot(w2c_ref[...], k2, preferred_element_type=jnp.float32)
    o_ref[0] = out + bout_ref[...]


# ----------------------- host-side prep (run ONCE) -------------------------- #

def _s2d_params(p_chw):
    # (C, H, W) -> (4*C, Hc*Wc); channel = (a*2+b)*C + c, space = i*Wc + j.
    p = np.asarray(p_chw, dtype=np.float32)
    C, H, W = p.shape
    Hc, Wc = H // 2, W // 2
    t = p.reshape(C, Hc, 2, Wc, 2)                  # (c, i, a, j, b)
    t = np.transpose(t, (2, 4, 0, 1, 3))            # (a, b, c, i, j)
    return t.reshape(4 * C, Hc * Wc)


def _conv3x3_s2d_matrix(w_oihw, pool_output):
    # Embed a 3x3 'same' conv into the coarse (space-to-depth) im2col basis.
    # Rows: tap(dh,dw) * 4*Cin + (p*2+q)*Cin + ci  (matches im2col_3x3 order).
    # Cols: (a*2+b)*Cout + co, or just co (2x2 mean pool folded in).
    w = np.asarray(w_oihw, dtype=np.float32)
    co_n, ci_n, K, _ = w.shape
    assert K == 3, "only kernel_size == 3 is implemented"
    ncol = co_n if pool_output else 4 * co_n
    Wm = np.zeros((9 * 4 * ci_n, ncol), np.float32)
    for a in range(2):
        for b in range(2):
            for kh in range(3):
                for kw in range(3):
                    mh, mw = a + kh - 1, b + kw - 1
                    dh, p = mh // 2, mh % 2
                    dw, q = mw // 2, mw % 2
                    row = ((dh + 1) * 3 + (dw + 1)) * (4 * ci_n) + (p * 2 + q) * ci_n
                    blk = w[:, :, kh, kw].T                 # (ci, co)
                    if pool_output:
                        Wm[row:row + ci_n, :] += 0.25 * blk
                    else:
                        col = (a * 2 + b) * co_n
                        Wm[row:row + ci_n, col:col + co_n] += blk
    return Wm


def _tap_masks(hc, wc, nc_per_chunk):
    R = hc * wc
    L = nc_per_chunk * R
    p = np.arange(L) % R
    ii, jj = p // wc, p % wc
    m = np.zeros((9, L), np.float32)
    t = 0
    for dh in (-1, 0, 1):
        for dw in (-1, 0, 1):
            valid = ((ii + dh >= 0) & (ii + dh < hc)
                     & (jj + dw >= 0) & (jj + dw < wc))
            m[t] = valid.astype(np.float32)
            t += 1
    return m


def _segment_matrix(nc_per_chunk, R):
    L = nc_per_chunk * R
    s = (np.arange(L)[:, None] // R) == (np.arange(L)[None, :] // R)
    return s.astype(np.float32)


def _pick_batch_chunks(N, R):
    # Prefer a 2-way split (v7x has 2 TensorCores) ONLY if each chunk keeps a
    # lane width that is a multiple of 128; otherwise one fat grid step
    # (each grid step costs ~0.35us, which dominates this tiny workload).
    for c in (2, 1):
        if N % c == 0 and ((N // c) * R) % 128 == 0:
            return c
    return 1


def prepare_residual_block_down(params, N, H, W):
    """One-time parameter repacking for residual_block_down (call once)."""
    Cin = params["w1"].shape[1]
    Cout = params["w_sc"].shape[0]
    Hc, Wc = H // 2, W // 2
    R = Hc * Wc
    chunks = _pick_batch_chunks(N, R)
    Nc = N // chunks

    g1 = np.tile(_s2d_params(params["ln1_g"]), (1, Nc))
    b1 = np.tile(_s2d_params(params["ln1_b"]), (1, Nc))
    g2 = np.tile(_s2d_params(params["ln2_g"]), (1, Nc))
    b2 = np.tile(_s2d_params(params["ln2_b"]), (1, Nc))

    w1m = _conv3x3_s2d_matrix(params["w1"], pool_output=False).T      # (4Cin, 36Cin)
    w2m = _conv3x3_s2d_matrix(params["w2"], pool_output=True).T       # (Cout, 36Cin)
    wsc = np.asarray(params["w_sc"], np.float32).reshape(Cout, Cin)
    w2c = np.concatenate([w2m, wsc], axis=1)                          # (Cout, 36Cin+Cin)
    bout = (np.asarray(params["b2"], np.float32)
            + np.asarray(params["b_sc"], np.float32)).reshape(Cout, 1)

    prepared = {
        "g1": g1, "b1": b1, "g2": g2, "b2": b2,
        "w1m": w1m, "w2c": w2c, "bout": bout,
        "masks": _tap_masks(Hc, Wc, Nc),
        "segmat": _segment_matrix(Nc, R),
    }
    return {k: jnp.asarray(v) for k, v in prepared.items()}


# ------------------------- ResidualBlock forward ---------------------------- #

def _space_to_depth_pack(x, chunks):
    # (N, C, H, W) -> (chunks, 4*C, Nc*Hc*Wc); channel = (a*2+b)*C + c,
    # lane = n*(Hc*Wc) + i*Wc + j  (batch folded onto the lane axis).
    N, C, H, W = x.shape
    Hc, Wc = H // 2, W // 2
    Nc = N // chunks
    t = x.reshape(chunks, Nc, C, Hc, 2, Wc, 2)      # (k, n, c, i, a, j, b)
    t = jnp.transpose(t, (0, 4, 6, 2, 1, 3, 5))     # (k, a, b, c, n, i, j)
    return t.reshape(chunks, 4 * C, Nc * Hc * Wc)


def residual_block_down(x_nchw, prepared, eps=1e-5):
    """ResidualBlock(input_dim, output_dim, kernel_size=3, resample='down', hw=H)."""
    N, Cin, H, W = x_nchw.shape
    Hc, Wc = H // 2, W // 2
    R = Hc * Wc
    Cs = 4 * Cin
    Cout = prepared["w2c"].shape[0]
    Lc = prepared["g1"].shape[1]                    # lanes per chunk
    chunks = (N * R) // Lc
    assert chunks * Lc == N * R and N % chunks == 0
    Nc = N // chunks

    x_pack = _space_to_depth_pack(x_nchw.astype(jnp.float32), chunks)  # (chunks, Cs, Lc)

    kernel = functools.partial(residual_block_down_kernel,
                               wc=Wc, cin=Cin,
                               inv_count=1.0 / float(Cin * H * W), eps=eps)
    const = lambda n: (0, 0)
    out = pl.pallas_call(
        kernel,
        out_shape=jax.ShapeDtypeStruct((chunks, Cout, Lc), jnp.float32),
        grid=(chunks,),
        in_specs=[
            pl.BlockSpec((1, Cs, Lc), lambda n: (n, 0, 0)),   # x (per chunk)
            pl.BlockSpec(prepared["g1"].shape, const),
            pl.BlockSpec(prepared["b1"].shape, const),
            pl.BlockSpec(prepared["g2"].shape, const),
            pl.BlockSpec(prepared["b2"].shape, const),
            pl.BlockSpec(prepared["w1m"].shape, const),
            pl.BlockSpec(prepared["w2c"].shape, const),
            pl.BlockSpec(prepared["bout"].shape, const),
            pl.BlockSpec(prepared["masks"].shape, const),
            pl.BlockSpec(prepared["segmat"].shape, const),
        ],
        out_specs=pl.BlockSpec((1, Cout, Lc), lambda n: (n, 0, 0)),
        compiler_params=pltpu.CompilerParams(
            dimension_semantics=("parallel",)),
    )(x_pack, prepared["g1"], prepared["b1"], prepared["g2"], prepared["b2"],
      prepared["w1m"], prepared["w2c"], prepared["bout"],
      prepared["masks"], prepared["segmat"])

    # Lane index is n*R + i*Wc + j -> unpack to NCHW at half resolution.
    out = out.reshape(chunks, Cout, Nc, Hc, Wc)
    return jnp.transpose(out, (0, 2, 1, 3, 4)).reshape(N, Cout, Hc, Wc)


# ------------------------------ reference ----------------------------------- #

def _ref_forward(x_nchw, params, eps=1e-5):
    x = jnp.transpose(x_nchw, (0, 2, 3, 1))

    def conv(h, w_oihw, b):
        K = w_oihw.shape[-1]
        p = (K - 1) // 2
        y = jax.lax.conv_general_dilated(
            h, jnp.transpose(w_oihw, (2, 3, 1, 0)), (1, 1), ((p, p), (p, p)),
            dimension_numbers=("NHWC", "HWIO", "NHWC"))
        return y if b is None else y + b

    def ln(h, g_chw, b_chw):
        g = jnp.transpose(g_chw, (1, 2, 0))
        b = jnp.transpose(b_chw, (1, 2, 0))
        m = jnp.mean(h, axis=(1, 2, 3), keepdims=True)
        v = jnp.mean((h - m) ** 2, axis=(1, 2, 3), keepdims=True)
        return (h - m) / jnp.sqrt(v + eps) * g + b

    def pool(h):
        return (h[:, ::2, ::2] + h[:, 1::2, ::2]
                + h[:, ::2, 1::2] + h[:, 1::2, 1::2]) / 4

    sc = conv(pool(x), params["w_sc"], params["b_sc"])
    h = jax.nn.relu(ln(x, params["ln1_g"], params["ln1_b"]))
    h = conv(h, params["w1"], None)
    h = jax.nn.relu(ln(h, params["ln2_g"], params["ln2_b"]))
    h = pool(conv(h, params["w2"], params["b2"]))
    return jnp.transpose(sc + h, (0, 3, 1, 2))


# --------------------------------- main -------------------------------------- #

if __name__ == "__main__":
    N, Cin, Cout, K, H, W = 2, 8, 16, 3, 16, 16   # ResidualBlock(8, 16, 3, 'down', hw=16)

    key = jax.random.PRNGKey(0)
    ks = jax.random.split(key, 10)
    params = {
        "ln1_g": 1.0 + 0.1 * jax.random.normal(ks[0], (Cin, H, W), jnp.float32),
        "ln1_b": 0.1 * jax.random.normal(ks[1], (Cin, H, W), jnp.float32),
        "ln2_g": 1.0 + 0.1 * jax.random.normal(ks[2], (Cin, H, W), jnp.float32),
        "ln2_b": 0.1 * jax.random.normal(ks[3], (Cin, H, W), jnp.float32),
        "w_sc": 0.1 * jax.random.normal(ks[4], (Cout, Cin, 1, 1), jnp.float32),
        "b_sc": 0.1 * jax.random.normal(ks[5], (Cout,), jnp.float32),
        "w1":   0.1 * jax.random.normal(ks[6], (Cin, Cin, K, K), jnp.float32),
        "w2":   0.1 * jax.random.normal(ks[7], (Cout, Cin, K, K), jnp.float32),
        "b2":   0.1 * jax.random.normal(ks[8], (Cout,), jnp.float32),
    }
    x = jax.random.normal(ks[9], (N, Cin, H, W), jnp.float32)

    # One-time parameter repacking (hoisted out of the jitted forward).
    prepared = prepare_residual_block_down(params, N=N, H=H, W=W)

    fwd = jax.jit(residual_block_down)
    out = jax.block_until_ready(fwd(x, prepared))
    assert out.shape == (N, Cout, H // 2, W // 2), out.shape

    ref = jax.block_until_ready(_ref_forward(x, params))
    max_err = float(jnp.max(jnp.abs(out - ref)))
    assert max_err < 1e-4, max_err

    print("KERNEL_OK")
</pallas_src>

<mosaic_0001>
module attributes {stable_mosaic.version = 11 : i64} {
  func.func @residual_block_down_kernel(%arg0: i32, %arg1: memref<1x32x128xf32, #tpu.memory_space<vmem>>, %arg2: memref<32x128xf32, #tpu.memory_space<vmem>>, %arg3: memref<32x128xf32, #tpu.memory_space<vmem>>, %arg4: memref<32x128xf32, #tpu.memory_space<vmem>>, %arg5: memref<32x128xf32, #tpu.memory_space<vmem>>, %arg6: memref<32x288xf32, #tpu.memory_space<vmem>>, %arg7: memref<16x296xf32, #tpu.memory_space<vmem>>, %arg8: memref<16x1xf32, #tpu.memory_space<vmem>>, %arg9: memref<9x128xf32, #tpu.memory_space<vmem>>, %arg10: memref<128x128xf32, #tpu.memory_space<vmem>>, %arg11: memref<1x16x128xf32, #tpu.memory_space<vmem>>) attributes {dimension_semantics = [#tpu.dimension_semantics<parallel>], iteration_bounds = array<i64: 1>, scalar_prefetch = 0 : i64, scratch_operands = 0 : i64, tpu.core_type = #tpu.core_type<tc>, window_params = [{transform_indices = @transform_0, window_bounds = array<i64: 1, 32, 128>}, {pipeline_mode = #tpu.pipeline_mode<synchronous>, transform_indices = @transform_1, window_bounds = array<i64: 32, 128>}, {pipeline_mode = #tpu.pipeline_mode<synchronous>, transform_indices = @transform_2, window_bounds = array<i64: 32, 128>}, {pipeline_mode = #tpu.pipeline_mode<synchronous>, transform_indices = @transform_3, window_bounds = array<i64: 32, 128>}, {pipeline_mode = #tpu.pipeline_mode<synchronous>, transform_indices = @transform_4, window_bounds = array<i64: 32, 128>}, {pipeline_mode = #tpu.pipeline_mode<synchronous>, transform_indices = @transform_5, window_bounds = array<i64: 32, 288>}, {pipeline_mode = #tpu.pipeline_mode<synchronous>, transform_indices = @transform_6, window_bounds = array<i64: 16, 296>}, {pipeline_mode = #tpu.pipeline_mode<synchronous>, transform_indices = @transform_7, window_bounds = array<i64: 16, 1>}, {pipeline_mode = #tpu.pipeline_mode<synchronous>, transform_indices = @transform_8, window_bounds = array<i64: 9, 128>}, {pipeline_mode = #tpu.pipeline_mode<synchronous>, transform_indices = @transform_9, window_bounds = array<i64: 128, 128>}, {transform_indices = @transform_10, window_bounds = array<i64: 1, 16, 128>}]} {
    %c0 = arith.constant 0 : index
    %c0_0 = arith.constant 0 : index
    %c0_1 = arith.constant 0 : index
    %0 = vector.load %arg1[%c0, %c0_0, %c0_1] : memref<1x32x128xf32, #tpu.memory_space<vmem>>, vector<1x32x128xf32>
    %1 = vector.shape_cast %0 : vector<1x32x128xf32> to vector<32x128xf32>
    %c0_2 = arith.constant 0 : index
    %c0_3 = arith.constant 0 : index
    %2 = vector.load %arg10[%c0_2, %c0_3] : memref<128x128xf32, #tpu.memory_space<vmem>>, vector<128x128xf32>
    %c0_4 = arith.constant 0 : index
    %c0_5 = arith.constant 0 : index
    %3 = vector.load %arg9[%c0_4, %c0_5] : memref<9x128xf32, #tpu.memory_space<vmem>>, vector<1x128xf32>
    %c1 = arith.constant 1 : index
    %c0_6 = arith.constant 0 : index
    %4 = vector.load %arg9[%c1, %c0_6] : memref<9x128xf32, #tpu.memory_space<vmem>>, vector<1x128xf32>
    %c2 = arith.constant 2 : index
    %c0_7 = arith.constant 0 : index
    %5 = vector.load %arg9[%c2, %c0_7] : memref<9x128xf32, #tpu.memory_space<vmem>>, vector<1x128xf32>
    %c3 = arith.constant 3 : index
    %c0_8 = arith.constant 0 : index
    %6 = vector.load %arg9[%c3, %c0_8] : memref<9x128xf32, #tpu.memory_space<vmem>>, vector<1x128xf32>
    %c5 = arith.constant 5 : index
    %c0_9 = arith.constant 0 : index
    %7 = vector.load %arg9[%c5, %c0_9] : memref<9x128xf32, #tpu.memory_space<vmem>>, vector<1x128xf32>
    %c6 = arith.constant 6 : index
    %c0_10 = arith.constant 0 : index
    %8 = vector.load %arg9[%c6, %c0_10] : memref<9x128xf32, #tpu.memory_space<vmem>>, vector<1x128xf32>
    %c7 = arith.constant 7 : index
    %c0_11 = arith.constant 0 : index
    %9 = vector.load %arg9[%c7, %c0_11] : memref<9x128xf32, #tpu.memory_space<vmem>>, vector<1x128xf32>
    %c8 = arith.constant 8 : index
    %c0_12 = arith.constant 0 : index
    %10 = vector.load %arg9[%c8, %c0_12] : memref<9x128xf32, #tpu.memory_space<vmem>>, vector<1x128xf32>
    %c0_13 = arith.constant 0 : index
    %c0_14 = arith.constant 0 : index
    %11 = vector.load %arg2[%c0_13, %c0_14] : memref<32x128xf32, #tpu.memory_space<vmem>>, vector<32x128xf32>
    %c0_15 = arith.constant 0 : index
    %c0_16 = arith.constant 0 : index
    %12 = vector.load %arg3[%c0_15, %c0_16] : memref<32x128xf32, #tpu.memory_space<vmem>>, vector<32x128xf32>
    %cst = arith.constant dense<0.000000e+00> : vector<128xf32>
    %13 = vector.multi_reduction <add>, %1, %cst [0] : vector<32x128xf32> to vector<128xf32>
    %14 = vector.shape_cast %13 : vector<128xf32> to vector<1x128xf32>
    %15 = arith.mulf %1, %1 : vector<32x128xf32>
    %cst_17 = arith.constant dense<0.000000e+00> : vector<128xf32>
    %16 = vector.multi_reduction <add>, %15, %cst_17 [0] : vector<32x128xf32> to vector<128xf32>
    %17 = vector.shape_cast %16 : vector<128xf32> to vector<1x128xf32>
    %cst_18 = arith.constant dense<0.000000e+00> : vector<1x128xf32>
    %18 = tpu.matmul %14, %2, %cst_18 {dimension_numbers = #tpu.dot_dimension_numbers<[1], [0], [0], [1], [0, 0, 1, 1], [], []>} : vector<1x128xf32>, vector<128x128xf32>, vector<1x128xf32> -> vector<1x128xf32>
    %cst_19 = arith.constant dense<0.000000e+00> : vector<1x128xf32>
    %19 = tpu.matmul %17, %2, %cst_19 {dimension_numbers = #tpu.dot_dimension_numbers<[1], [0], [0], [1], [0, 0, 1, 1], [], []>} : vector<1x128xf32>, vector<128x128xf32>, vector<1x128xf32> -> vector<1x128xf32>
    %cst_20 = arith.constant 4.8828125E-4 : f32
    %20 = vector.broadcast %cst_20 : f32 to vector<1x128xf32>
    %21 = arith.mulf %18, %20 : vector<1x128xf32>
    %cst_21 = arith.constant 4.8828125E-4 : f32
    %22 = vector.broadcast %cst_21 : f32 to vector<1x128xf32>
    %23 = arith.mulf %19, %22 : vector<1x128xf32>
    %24 = arith.mulf %21, %21 : vector<1x128xf32>
    %25 = arith.subf %23, %24 : vector<1x128xf32>
    %26 = vector.broadcast %21 : vector<1x128xf32> to vector<32x128xf32>
    %27 = arith.subf %1, %26 : vector<32x128xf32>
    %cst_22 = arith.constant 9.99999974E-6 : f32
    %28 = vector.broadcast %cst_22 : f32 to vector<1x128xf32>
    %29 = arith.addf %25, %28 : vector<1x128xf32>
    %30 = math.rsqrt %29 : vector<1x128xf32>
    %31 = vector.broadcast %30 : vector<1x128xf32> to vector<32x128xf32>
    %32 = arith.mulf %27, %31 : vector<32x128xf32>
    %33 = arith.mulf %32, %11 : vector<32x128xf32>
    %34 = arith.addf %33, %12 : vector<32x128xf32>
    %cst_23 = arith.constant 0.000000e+00 : f32
    %35 = vector.broadcast %cst_23 : f32 to vector<32x128xf32>
    %36 = arith.maximumf %34, %35 : vector<32x128xf32>
    %c0_24 = arith.constant 0 : index
    %c0_25 = arith.constant 0 : index
    %37 = vector.load %arg6[%c0_24, %c0_25] : memref<32x288xf32, #tpu.memory_space<vmem>>, vector<32x288xf32>
    %c9_i32 = arith.constant 9 : i32
    %38 = tpu.dynamic_rotate %36 by %c9_i32 dim 1 : vector<32x128xf32>, i32 -> vector<32x128xf32>
    %39 = vector.broadcast %3 : vector<1x128xf32> to vector<32x128xf32>
    %40 = arith.mulf %38, %39 : vector<32x128xf32>
    %c8_i32 = arith.constant 8 : i32
    %41 = tpu.dynamic_rotate %36 by %c8_i32 dim 1 : vector<32x128xf32>, i32 -> vector<32x128xf32>
    %42 = vector.broadcast %4 : vector<1x128xf32> to vector<32x128xf32>
    %43 = arith.mulf %41, %42 : vector<32x128xf32>
    %c7_i32 = arith.constant 7 : i32
    %44 = tpu.dynamic_rotate %36 by %c7_i32 dim 1 : vector<32x128xf32>, i32 -> vector<32x128xf32>
    %45 = vector.broadcast %5 : vector<1x128xf32> to vector<32x128xf32>
    %46 = arith.mulf %44, %45 : vector<32x128xf32>
    %c1_i32 = arith.constant 1 : i32
    %47 = tpu.dynamic_rotate %36 by %c1_i32 dim 1 : vector<32x128xf32>, i32 -> vector<32x128xf32>
    %48 = vector.broadcast %6 : vector<1x128xf32> to vector<32x128xf32>
    %49 = arith.mulf %47, %48 : vector<32x128xf32>
    %c127_i32 = arith.constant 127 : i32
    %50 = tpu.dynamic_rotate %36 by %c127_i32 dim 1 : vector<32x128xf32>, i32 -> vector<32x128xf32>
    %51 = vector.broadcast %7 : vector<1x128xf32> to vector<32x128xf32>
    %52 = arith.mulf %50, %51 : vector<32x128xf32>
    %c121_i32 = arith.constant 121 : i32
    %53 = tpu.dynamic_rotate %36 by %c121_i32 dim 1 : vector<32x128xf32>, i32 -> vector<32x128xf32>
    %54 = vector.broadcast %8 : vector<1x128xf32> to vector<32x128xf32>
    %55 = arith.mulf %53, %54 : vector<32x128xf32>
    %c120_i32 = arith.constant 120 : i32
    %56 = tpu.dynamic_rotate %36 by %c120_i32 dim 1 : vector<32x128xf32>, i32 -> vector<32x128xf32>
    %57 = vector.broadcast %9 : vector<1x128xf32> to vector<32x128xf32>
    %58 = arith.mulf %56, %57 : vector<32x128xf32>
    %c119_i32 = arith.constant 119 : i32
    %59 = tpu.dynamic_rotate %36 by %c119_i32 dim 1 : vector<32x128xf32>, i32 -> vector<32x128xf32>
    %60 = vector.broadcast %10 : vector<1x128xf32> to vector<32x128xf32>
    %61 = arith.mulf %59, %60 : vector<32x128xf32>
    %62 = tpu.concatenate %40, %43, %46, %49, %36, %52, %55, %58, %61 in 0 : vector<32x128xf32>, vector<32x128xf32>, vector<32x128xf32>, vector<32x128xf32>, vector<32x128xf32>, vector<32x128xf32>, vector<32x128xf32>, vector<32x128xf32>, vector<32x128xf32> -> vector<288x128xf32>
    %cst_26 = arith.constant dense<0.000000e+00> : vector<32x128xf32>
    %63 = tpu.matmul %37, %62, %cst_26 {dimension_numbers = #tpu.dot_dimension_numbers<[1], [0], [0], [1], [0, 0, 1, 1], [], []>} : vector<32x288xf32>, vector<288x128xf32>, vector<32x128xf32> -> vector<32x128xf32>
    %c0_27 = arith.constant 0 : index
    %c0_28 = arith.constant 0 : index
    %64 = vector.load %arg4[%c0_27, %c0_28] : memref<32x128xf32, #tpu.memory_space<vmem>>, vector<32x128xf32>
    %c0_29 = arith.constant 0 : index
    %c0_30 = arith.constant 0 : index
    %65 = vector.load %arg5[%c0_29, %c0_30] : memref<32x128xf32, #tpu.memory_space<vmem>>, vector<32x128xf32>
    %cst_31 = arith.constant dense<0.000000e+00> : vector<128xf32>
    %66 = vector.multi_reduction <add>, %63, %cst_31 [0] : vector<32x128xf32> to vector<128xf32>
    %67 = vector.shape_cast %66 : vector<128xf32> to vector<1x128xf32>
    %68 = arith.mulf %63, %63 : vector<32x128xf32>
    %cst_32 = arith.constant dense<0.000000e+00> : vector<128xf32>
    %69 = vector.multi_reduction <add>, %68, %cst_32 [0] : vector<32x128xf32> to vector<128xf32>
    %70 = vector.shape_cast %69 : vector<128xf32> to vector<1x128xf32>
    %cst_33 = arith.constant dense<0.000000e+00> : vector<1x128xf32>
    %71 = tpu.matmul %67, %2, %cst_33 {dimension_numbers = #tpu.dot_dimension_numbers<[1], [0], [0], [1], [0, 0, 1, 1], [], []>} : vector<1x128xf32>, vector<128x128xf32>, vector<1x128xf32> -> vector<1x128xf32>
    %cst_34 = arith.constant dense<0.000000e+00> : vector<1x128xf32>
    %72 = tpu.matmul %70, %2, %cst_34 {dimension_numbers = #tpu.dot_dimension_numbers<[1], [0], [0], [1], [0, 0, 1, 1], [], []>} : vector<1x128xf32>, vector<128x128xf32>, vector<1x128xf32> -> vector<1x128xf32>
    %cst_35 = arith.constant 4.8828125E-4 : f32
    %73 = vector.broadcast %cst_35 : f32 to vector<1x128xf32>
    %74 = arith.mulf %71, %73 : vector<1x128xf32>
    %cst_36 = arith.constant 4.8828125E-4 : f32
    %75 = vector.broadcast %cst_36 : f32 to vector<1x128xf32>
    %76 = arith.mulf %72, %75 : vector<1x128xf32>
    %77 = arith.mulf %74, %74 : vector<1x128xf32>
    %78 = arith.subf %76, %77 : vector<1x128xf32>
    %79 = vector.broadcast %74 : vector<1x128xf32> to vector<32x128xf32>
    %80 = arith.subf %63, %79 : vector<32x128xf32>
    %cst_37 = arith.constant 9.99999974E-6 : f32
    %81 = vector.broadcast %cst_37 : f32 to vector<1x128xf32>
    %82 = arith.addf %78, %81 : vector<1x128xf32>
    %83 = math.rsqrt %82 : vector<1x128xf32>
    %84 = vector.broadcast %83 : vector<1x128xf32> to vector<32x128xf32>
    %85 = arith.mulf %80, %84 : vector<32x128xf32>
    %86 = arith.mulf %85, %64 : vector<32x128xf32>
    %87 = arith.addf %86, %65 : vector<32x128xf32>
    %cst_38 = arith.constant 0.000000e+00 : f32
    %88 = vector.broadcast %cst_38 : f32 to vector<32x128xf32>
    %89 = arith.maximumf %87, %88 : vector<32x128xf32>
    %90 = vector.extract_strided_slice %1 {offsets = [0, 0], sizes = [8, 128], strides = [1, 1]} : vector<32x128xf32> to vector<8x128xf32>
    %91 = vector.extract_strided_slice %1 {offsets = [8, 0], sizes = [8, 128], strides = [1, 1]} : vector<32x128xf32> to vector<8x128xf32>
    %92 = arith.addf %90, %91 : vector<8x128xf32>
    %93 = vector.extract_strided_slice %1 {offsets = [16, 0], sizes = [8, 128], strides = [1, 1]} : vector<32x128xf32> to vector<8x128xf32>
    %94 = arith.addf %92, %93 : vector<8x128xf32>
    %95 = vector.extract_strided_slice %1 {offsets = [24, 0], sizes = [8, 128], strides = [1, 1]} : vector<32x128xf32> to vector<8x128xf32>
    %96 = arith.addf %94, %95 : vector<8x128xf32>
    %cst_39 = arith.constant 2.500000e-01 : f32
    %97 = vector.broadcast %cst_39 : f32 to vector<8x128xf32>
    %98 = arith.mulf %97, %96 : vector<8x128xf32>
    %c9_i32_40 = arith.constant 9 : i32
    %99 = tpu.dynamic_rotate %89 by %c9_i32_40 dim 1 : vector<32x128xf32>, i32 -> vector<32x128xf32>
    %100 = vector.broadcast %3 : vector<1x128xf32> to vector<32x128xf32>
    %101 = arith.mulf %99, %100 : vector<32x128xf32>
    %c8_i32_41 = arith.constant 8 : i32
    %102 = tpu.dynamic_rotate %89 by %c8_i32_41 dim 1 : vector<32x128xf32>, i32 -> vector<32x128xf32>
    %103 = vector.broadcast %4 : vector<1x128xf32> to vector<32x128xf32>
    %104 = arith.mulf %102, %103 : vector<32x128xf32>
    %c7_i32_42 = arith.constant 7 : i32
    %105 = tpu.dynamic_rotate %89 by %c7_i32_42 dim 1 : vector<32x128xf32>, i32 -> vector<32x128xf32>
    %106 = vector.broadcast %5 : vector<1x128xf32> to vector<32x128xf32>
    %107 = arith.mulf %105, %106 : vector<32x128xf32>
    %c1_i32_43 = arith.constant 1 : i32
    %108 = tpu.dynamic_rotate %89 by %c1_i32_43 dim 1 : vector<32x128xf32>, i32 -> vector<32x128xf32>
    %109 = vector.broadcast %6 : vector<1x128xf32> to vector<32x128xf32>
    %110 = arith.mulf %108, %109 : vector<32x128xf32>
    %c127_i32_44 = arith.constant 127 : i32
    %111 = tpu.dynamic_rotate %89 by %c127_i32_44 dim 1 : vector<32x128xf32>, i32 -> vector<32x128xf32>
    %112 = vector.broadcast %7 : vector<1x128xf32> to vector<32x128xf32>
    %113 = arith.mulf %111, %112 : vector<32x128xf32>
    %c121_i32_45 = arith.constant 121 : i32
    %114 = tpu.dynamic_rotate %89 by %c121_i32_45 dim 1 : vector<32x128xf32>, i32 -> vector<32x128xf32>
    %115 = vector.broadcast %8 : vector<1x128xf32> to vector<32x128xf32>
    %116 = arith.mulf %114, %115 : vector<32x128xf32>
    %c120_i32_46 = arith.constant 120 : i32
    %117 = tpu.dynamic_rotate %89 by %c120_i32_46 dim 1 : vector<32x128xf32>, i32 -> vector<32x128xf32>
    %118 = vector.broadcast %9 : vector<1x128xf32> to vector<32x128xf32>
    %119 = arith.mulf %117, %118 : vector<32x128xf32>
    %c119_i32_47 = arith.constant 119 : i32
    %120 = tpu.dynamic_rotate %89 by %c119_i32_47 dim 1 : vector<32x128xf32>, i32 -> vector<32x128xf32>
    %121 = vector.broadcast %10 : vector<1x128xf32> to vector<32x128xf32>
    %122 = arith.mulf %120, %121 : vector<32x128xf32>
    %123 = tpu.concatenate %101, %104, %107, %110, %89, %113, %116, %119, %122, %98 in 0 : vector<32x128xf32>, vector<32x128xf32>, vector<32x128xf32>, vector<32x128xf32>, vector<32x128xf32>, vector<32x128xf32>, vector<32x128xf32>, vector<32x128xf32>, vector<32x128xf32>, vector<8x128xf32> -> vector<296x128xf32>
    %c0_48 = arith.constant 0 : index
    %c0_49 = arith.constant 0 : index
    %124 = vector.load %arg7[%c0_48, %c0_49] : memref<16x296xf32, #tpu.memory_space<vmem>>, vector<16x296xf32>
    %cst_50 = arith.constant dense<0.000000e+00> : vector<16x128xf32>
    %125 = tpu.matmul %124, %123, %cst_50 {dimension_numbers = #tpu.dot_dimension_numbers<[1], [0], [0], [1], [0, 0, 1, 1], [], []>} : vector<16x296xf32>, vector<296x128xf32>, vector<16x128xf32> -> vector<16x128xf32>
    %c0_51 = arith.constant 0 : index
    %c0_52 = arith.constant 0 : index
    %126 = vector.load %arg8[%c0_51, %c0_52] : memref<16x1xf32, #tpu.memory_space<vmem>>, vector<16x1xf32>
    %127 = vector.broadcast %126 : vector<16x1xf32> to vector<16x128xf32>
    %128 = arith.addf %125, %127 : vector<16x128xf32>
    %c0_53 = arith.constant 0 : index
    %c0_54 = arith.constant 0 : index
    %c0_55 = arith.constant 0 : index
    %129 = vector.load %arg11[%c0_53, %c0_54, %c0_55] : memref<1x16x128xf32, #tpu.memory_space<vmem>>, vector<1x16x128xf32>
    %130 = vector.shape_cast %129 : vector<1x16x128xf32> to vector<16x128xf32>
    %131 = vector.shape_cast %128 : vector<16x128xf32> to vector<1x16x128xf32>
    tpu.vector_store %arg11[%c0_53, %c0_54, %c0_55], %131 {strides = array<i32>} : memref<1x16x128xf32, #tpu.memory_space<vmem>>, vector<1x16x128xf32>,
    return
  }
  func.func @transform_0(%arg0: i32) -> (i32, i32, i32) {
    %c0_i32 = arith.constant 0 : i32
    %c0_i32_0 = arith.constant 0 : i32
    %c0_i32_1 = arith.constant 0 : i32
    return %arg0, %c0_i32, %c0_i32_0 : i32, i32, i32
  }
  func.func @transform_1(%arg0: i32) -> (i32, i32) {
    %c0_i32 = arith.constant 0 : i32
    %c0_i32_0 = arith.constant 0 : i32
    %c0_i32_1 = arith.constant 0 : i32
    return %c0_i32, %c0_i32_0 : i32, i32
  }
  func.func @transform_2(%arg0: i32) -> (i32, i32) {
    %c0_i32 = arith.constant 0 : i32
    %c0_i32_0 = arith.constant 0 : i32
    %c0_i32_1 = arith.constant 0 : i32
    return %c0_i32, %c0_i32_0 : i32, i32
  }
  func.func @transform_3(%arg0: i32) -> (i32, i32) {
    %c0_i32 = arith.constant 0 : i32
    %c0_i32_0 = arith.constant 0 : i32
    %c0_i32_1 = arith.constant 0 : i32
    return %c0_i32, %c0_i32_0 : i32, i32
  }
  func.func @transform_4(%arg0: i32) -> (i32, i32) {
    %c0_i32 = arith.constant 0 : i32
    %c0_i32_0 = arith.constant 0 : i32
    %c0_i32_1 = arith.constant 0 : i32
    return %c0_i32, %c0_i32_0 : i32, i32
  }
  func.func @transform_5(%arg0: i32) -> (i32, i32) {
    %c0_i32 = arith.constant 0 : i32
    %c0_i32_0 = arith.constant 0 : i32
    %c0_i32_1 = arith.constant 0 : i32
    return %c0_i32, %c0_i32_0 : i32, i32
  }
  func.func @transform_6(%arg0: i32) -> (i32, i32) {
    %c0_i32 = arith.constant 0 : i32
    %c0_i32_0 = arith.constant 0 : i32
    %c0_i32_1 = arith.constant 0 : i32
    return %c0_i32, %c0_i32_0 : i32, i32
  }
  func.func @transform_7(%arg0: i32) -> (i32, i32) {
    %c0_i32 = arith.constant 0 : i32
    %c0_i32_0 = arith.constant 0 : i32
    %c0_i32_1 = arith.constant 0 : i32
    return %c0_i32, %c0_i32_0 : i32, i32
  }
  func.func @transform_8(%arg0: i32) -> (i32, i32) {
    %c0_i32 = arith.constant 0 : i32
    %c0_i32_0 = arith.constant 0 : i32
    %c0_i32_1 = arith.constant 0 : i32
    return %c0_i32, %c0_i32_0 : i32, i32
  }
  func.func @transform_9(%arg0: i32) -> (i32, i32) {
    %c0_i32 = arith.constant 0 : i32
    %c0_i32_0 = arith.constant 0 : i32
    %c0_i32_1 = arith.constant 0 : i32
    return %c0_i32, %c0_i32_0 : i32, i32
  }
  func.func @transform_10(%arg0: i32) -> (i32, i32, i32) {
    %c0_i32 = arith.constant 0 : i32
    %c0_i32_0 = arith.constant 0 : i32
    %c0_i32_1 = arith.constant 0 : i32
    return %arg0, %c0_i32, %c0_i32_0 : i32, i32, i32
  }
}

</mosaic_0001>

<bundles_post_ra>
// kernel: residual_block_down.1
= control target key start
LH: loop header
LB: loop body
LE: loop exit
PB: predicated region body
PF: predicated region fallthrough
CT: control target
= control target key end

     0   :  { %v1612_v0 = vmov 0.0|0.0   ;;  %vm1613_vm0 = vmmov 0   ;;  %v1614_v6 = vmov 0.0   ;;  %v237_v59 = vlaneseq  ;;  %s1617_s26 = smov 8   ;;  %s1618_s27 = smov 121   ;;  %s2172_s9 = inlined_call_operand.vmem [shape: f32[128,128], index: 9, kind: input, shape index: {}]   ;;  %s2173_s0 = inlined_call_operand.vmem [shape: f32[1,32,128], index: 0, kind: input, shape index: {}]   ;;  %s2174_s1 = inlined_call_operand.vmem [shape: f32[32,128], index: 1, kind: input, shape index: {}]   ;;  %s2175_s2 = inlined_call_operand.vmem [shape: f32[32,128], index: 2, kind: input, shape index: {}]   ;;  %s2176_s5 = inlined_call_operand.vmem [shape: f32[32,288], index: 5, kind: input, shape index: {}]   ;;  %s2177_s8 = inlined_call_operand.vmem [shape: f32[9,128], index: 8, kind: input, shape index: {}]   ;;  %s2178_s3 = inlined_call_operand.vmem [shape: f32[32,128], index: 3, kind: input, shape index: {}]   ;;  %s2179_s4 = inlined_call_operand.vmem [shape: f32[32,128], index: 4, kind: input, shape index: {}]   ;;  %s2180_s6 = inlined_call_operand.vmem [shape: f32[16,296], index: 6, kind: input, shape index: {}]   ;;  %s2181_s7 = inlined_call_operand.vmem [shape: f32[16,1], index: 7, kind: input, shape index: {}]   ;;  %s2182_s10 = inlined_call_operand.vmem [shape: f32[1,16,128], index: 10, kind: output, shape index: {}]  }
   0x1   :  { %1418 = vmatprep.subr.bf16.mxu0 %v1612_v0  ;;  %v39_v1 = vld [vmem:[%s2172_s9] sm:$0xff]  ;;  %v40_v2 = vld [vmem:[%s2172_s9 + $0x8] sm:$0xff]  ;;  %1442 = vmatprep.subr.bf16.mxu1 %v1612_v0  ;;  %v41_v3 = vld [vmem:[%s2172_s9 + $0x10] sm:$0xff]  ;;  %s1619_s28 = smov 7   ;;  %s1620_s29 = smov 120   ;;  %vm407_vm1 = vcmask 261120  }
   0x2   :  { %v1690_v4 = vpack.c.bf16 %v40_v2, %v39_v1  ;;  %v42_v5 = vld [vmem:[%s2172_s9 + $0x18] sm:$0xff]  ;;  %1283 = vmatprep.mubr.msk.f32.mxu0 %vm1613_vm0, %v1614_v6  ;;  %1318 = vmatprep.mubr.msk.f32.mxu1 %vm1613_vm0, %v1614_v6  ;;  %v43_v8 = vld [vmem:[%s2172_s9 + $0x20] sm:$0xff]  ;;  %v44_v9 = vld [vmem:[%s2172_s9 + $0x28] sm:$0xff]  ;;  %v238_v61 = vshrl.u32 %v237_v59, 7  ;;  %s1621_s30 = smov 1   ;;  %s1622_s13 = smov 119  }
   0x3   :  { %v1701_v7 = vpack.c.bf16 %v42_v5, %v41_v3  ;;  %v1714_v10 = vld [vmem:[%s2173_s0] sm:$0xff]  ;;  %v1719_v11 = vld [vmem:[%s2173_s0 + $0x8] sm:$0xff]  ;;  %v1724_v12 = vld [vmem:[%s2173_s0 + $0x10] sm:$0xff]  ;;  %v1739_v17 = vpack.c.bf16 %v44_v9, %v43_v8  ;;  %vm909_vm2 = vcmask 326656  }
   0x4   :  { %1420 = vmatpush3.bf16.msra.mxu0 %v1690_v4  ;;  %1444 = vmatpush3.bf16.msra.mxu1 %v1690_v4  ;;  %v1729_v13 = vld [vmem:[%s2173_s0 + $0x18] sm:$0xff]  ;;  %v71_v14 = vadd.f32 %v1719_v11, %v1714_v10  ;;  %v80_v15 = vmul.f32 %v1714_v10, %v1714_v10  ;;  %v81_v16 = vmul.f32 %v1719_v11, %v1719_v11  ;;  %v45_v19 = vld [vmem:[%s2172_s9 + $0x30] sm:$0xff]  ;;  %v47_v27 = vld [vmem:[%s2172_s9 + $0x40] sm:$0xff]  ;;  %v1815_v63 = vsub.s32 0, %v238_v61 }
   0x5   :  { %1421 = vmatprep.subr.bf16.mxu0 %v1612_v0  ;;  %1445 = vmatprep.subr.bf16.mxu1 %v1612_v0  ;;  %v82_v18 = vmul.f32 %v1724_v12, %v1724_v12  ;;  %v46_v20 = vld [vmem:[%s2172_s9 + $0x38] sm:$0xff]  ;;  %v83_v22 = vmul.f32 %v1729_v13, %v1729_v13  ;;  %v48_v28 = vld [vmem:[%s2172_s9 + $0x48] sm:$0xff]  ;;  %v49_v34 = vld [vmem:[%s2172_s9 + $0x50] sm:$0xff] }
   0x6   :  { %v72_v21 = vadd.f32 %v71_v14, %v1724_v12  ;;  %v84_v23 = vadd.f32 %v81_v16, %v80_v15  ;;  %v1759_v26 = vpack.c.bf16 %v46_v20, %v45_v19  ;;  %v1773_v33 = vpack.c.bf16 %v48_v28, %v47_v27  ;;  %v50_v35 = vld [vmem:[%s2172_s9 + $0x58] sm:$0xff]  ;;  %v51_v40 = vld [vmem:[%s2172_s9 + $0x60] sm:$0xff]  ;;  %v52_v41 = vld [vmem:[%s2172_s9 + $0x68] sm:$0xff] }
   0x7   :  { %v1785_v39 = vpack.c.bf16 %v50_v35, %v49_v34  ;;  %v1797_v44 = vpack.c.bf16 %v52_v41, %v51_v40  ;;  %v53_v45 = vld [vmem:[%s2172_s9 + $0x70] sm:$0xff]  ;;  %v54_v46 = vld [vmem:[%s2172_s9 + $0x78] sm:$0xff]  ;;  %v63_v14 = vld [vmem:[%s2174_s1] sm:$0xff] }
   0x8   :  { %1423 = vmatpush3.bf16.msra.mxu0 %v1701_v7  ;;  %1447 = vmatpush3.bf16.msra.mxu1 %v1701_v7  ;;  %v1755_v24 = vadd.f32 %v72_v21, %v1729_v13  ;;  %v85_v25 = vadd.f32 %v84_v23, %v82_v18  ;;  %v1809_v49 = vpack.c.bf16 %v54_v46, %v53_v45  ;;  %v64_v16 = vld [vmem:[%s2174_s1 + $0x8] sm:$0xff]  ;;  %v70_v23 = vld [vmem:[%s2175_s2 + $0x18] sm:$0xff]  ;;  %v1927_v61 = vld [vmem:[%s2177_s8 + $0x1] ss:$0 sm:$0xff] }
   0x9   :  { %1424 = vmatprep.subr.bf16.mxu0 %v1612_v0  ;;  %1448 = vmatprep.subr.bf16.mxu1 %v1612_v0  ;;  %v68_v21 = vld [vmem:[%s2175_s2 + $0x8] sm:$0xff] }
   0xa   :  { %v74_v29 = vrot.slane %v1755_v24, 4  ;;  %v86_v30 = vadd.f32 %v85_v25, %v83_v22  ;;  %v69_v22 = vld [vmem:[%s2175_s2 + $0x10] sm:$0xff] }
   0xc   :  { %1426 = vmatpush3.bf16.msra.mxu0 %v1739_v17  ;;  %1450 = vmatpush3.bf16.msra.mxu1 %v1739_v17  ;;  %v75_v31 = vadd.f32 %v74_v29, %v1755_v24  ;;  %v87_v32 = vrot.slane %v86_v30, 4 }
   0xd   :  { %1427 = vmatprep.subr.bf16.mxu0 %v1612_v0  ;;  %1451 = vmatprep.subr.bf16.mxu1 %v1612_v0 }
   0xe   :  { %v88_v36 = vadd.f32 %v87_v32, %v86_v30  ;;  %v76_v37 = vrot.slane %v75_v31, 2 }
  0x10   :  { %1429 = vmatpush3.bf16.msra.mxu0 %v1759_v26  ;;  %1453 = vmatpush3.bf16.msra.mxu1 %v1759_v26  ;;  %v89_v38 = vrot.slane %v88_v36, 2  ;;  %v77_v42 = vadd.f32 %v76_v37, %v75_v31 }
  0x11   :  { %1430 = vmatprep.subr.bf16.mxu0 %v1612_v0  ;;  %1454 = vmatprep.subr.bf16.mxu1 %v1612_v0 }
  0x12   :  { %v90_v43 = vadd.f32 %v89_v38, %v88_v36  ;;  %v78_v47 = vrot.slane %v77_v42, 1 }
  0x14   :  { %1432 = vmatpush3.bf16.msra.mxu0 %v1773_v33  ;;  %1456 = vmatpush3.bf16.msra.mxu1 %v1773_v33  ;;  %v91_v48 = vrot.slane %v90_v43, 1  ;;  %v79_v50 = vadd.f32 %v78_v47, %v77_v42  ;;  %v268_v42 = vld [vmem:[%s2176_s5 + $0x8] sm:$0xff]  ;;  %v1911_v47 = vld [vmem:[%s2177_s8] ss:$0 sm:$0xff] }
  0x15   :  { %1433 = vmatprep.subr.bf16.mxu0 %v1612_v0  ;;  %1457 = vmatprep.subr.bf16.mxu1 %v1612_v0 }
  0x16   :  { %v92_v51 = vadd.f32 %v91_v48, %v90_v43  ;;  %v269_v43 = vld [vmem:[%s2176_s5 + $0x10] sm:$0xff] }
  0x18   :  { %1435 = vmatpush3.bf16.msra.mxu0 %v1785_v39  ;;  %1459 = vmatpush3.bf16.msra.mxu1 %v1785_v39 }
  0x19   :  { %1436 = vmatprep.subr.bf16.mxu0 %v1612_v0  ;;  %1460 = vmatprep.subr.bf16.mxu1 %v1612_v0 }
  0x1c   :  { %1438 = vmatpush3.bf16.msra.mxu0 %v1797_v44  ;;  %1462 = vmatpush3.bf16.msra.mxu1 %v1797_v44 }
  0x1d   :  { %1439 = vmatprep.subr.bf16.mxu0 %v1612_v0  ;;  %1463 = vmatprep.subr.bf16.mxu1 %v1612_v0 }
  0x20   :  { %1441 = vmatpush3.bf16.msra.mxu0 %v1809_v49  ;;  %1465 = vmatpush3.bf16.msra.mxu1 %v1809_v49 }
  0x23   :  { %1284 = vmatmul.mubr.f32.vlgmr.msra.gmra.mrb[0].mxu0 %v79_v50  ;;  %1319 = vmatmul.mubr.f32.vlgmr.msra.gmra.mrb[0].mxu1 %v92_v51 }
  0x24   :  { %484 = vmatprep.mubr.f32.mxu0 %v268_v42  ;;  %1329 = vmatprep.mubr.msk.f32.mxu1 %vm407_vm1, %v269_v43 }
  0xf6   :  { %v159_v52 = vpop.f32.mrb[0].mxu0  ;;  %v229_v53 = vpop.f32.mrb[0].mxu1 }
  0xf7   :  { %v233_v54 = vmul.f32 0.00048828125, %v159_v52  ;;  %v1285_v55 = vpop.f32.mrb[1].mxu0  ;;  %v1320_v56 = vpop.f32.mrb[1].mxu1  ;;  %v234_v57 = vmul.f32 0.00048828125, %v229_v53  ;;  %v1918_v53 = vld [vmem:[%s2177_s8 + $0x5] ss:$0 sm:$0xff] }
  0xf9   :  { %v235_v58 = vmul.f32 %v233_v54, %v233_v54  ;;  %v240_v1 = vrot.slane %v233_v54, %v1815_v63 }
  0xfb   :  { %v236_v60 = vsub.f32 %v234_v57, %v235_v58  ;;  %v241_v3 = vsub.f32 %v1714_v10, %v240_v1  ;;  %v242_v5 = vsub.f32 %v1719_v11, %v240_v1  ;;  %v243_v8 = vsub.f32 %v1724_v12, %v240_v1  ;;  %v65_v10 = vld [vmem:[%s2174_s1 + $0x10] sm:$0xff]  ;;  %v66_v11 = vld [vmem:[%s2174_s1 + $0x18] sm:$0xff]  ;;  %v67_v12 = vld [vmem:[%s2175_s2] sm:$0xff]  ;;  %s1615_s1 = smov 9   ;;  %s1616_s2 = smov 127  }
  0xfc   :  { %v244_v9 = vsub.f32 %v1729_v13, %v240_v1 }
  0xfd   :  { %v245_v62 = vadd.f32 1e-05, %v236_v60 }
  0xff   :  { %1608 = vrsqrt.f32 %v245_v62 }
 0x109   :  { %v1609_v2 = vpop.eup %1608 }
 0x10a   :  { %v250_v15 = vrot.slane %v1609_v2, %v1815_v63 }
 0x10c   :  { %v251_v13 = vmul.f32 %v250_v15, %v241_v3  ;;  %v252_v18 = vmul.f32 %v250_v15, %v242_v5  ;;  %v253_v19 = vmul.f32 %v250_v15, %v243_v8  ;;  %v254_v20 = vmul.f32 %v250_v15, %v244_v9 }
 0x10e   :  { %v255_v25 = vmul.f32 %v251_v13, %v63_v14  ;;  %v256_v27 = vmul.f32 %v252_v18, %v64_v16  ;;  %v257_v28 = vmul.f32 %v253_v19, %v65_v10  ;;  %v258_v29 = vmul.f32 %v254_v20, %v66_v11  ;;  %v1938_v20 = vld [vmem:[%s2177_s8 + $0x6] ss:$0 sm:$0xff] }
 0x110   :  { %v259_v30 = vadd.f32 %v255_v25, %v67_v12  ;;  %v260_v31 = vadd.f32 %v256_v27, %v68_v21  ;;  %v261_v32 = vadd.f32 %v257_v28, %v69_v22  ;;  %v262_v34 = vadd.f32 %v258_v29, %v70_v23  ;;  %v1945_v28 = vld [vmem:[%s2177_s8 + $0x2] ss:$0 sm:$0xff] }
 0x112   :  { %v263_v35 = vmax.f32 %v259_v30, 0.0  ;;  %v264_v36 = vmax.f32 %v260_v31, 0.0  ;;  %v1847_v37 = vmax.f32 %v261_v32, 0.0  ;;  %v1849_v38 = vmax.f32 %v262_v34, 0.0 }
 0x114   :  { %283 = vrot.lane.b32.xlu1 %v1847_v37, %s1615_s1  ;;  %279 = vrot.lane.b32.xlu0 %v263_v35, %s1615_s1  ;;  %v1466_v40 = vpack.c.bf16 %v264_v36, %v263_v35  ;;  %v1470_v41 = vpack.c.bf16 %v1849_v38, %v1847_v37 }
 0x116   :  { %1467 = vmatprep.subr.bf16.mxu0 %v1466_v40 }
 0x118   :  { %285 = vrot.lane.b32.xlu1 %v1849_v38, %s1615_s1  ;;  %281 = vrot.lane.b32.xlu0 %v264_v36, %s1615_s1 }
 0x11c   :  { %345 = vrot.lane.b32.xlu1 %v264_v36, %s1616_s2  ;;  %343 = vrot.lane.b32.xlu0 %v263_v35, %s1616_s2 }
 0x120   :  { %297 = vrot.lane.b32.xlu1 %v264_v36, %s1617_s26  ;;  %295 = vrot.lane.b32.xlu0 %v263_v35, %s1617_s26 }
 0x124   :  { %349 = vrot.lane.b32.xlu1 %v1849_v38, %s1616_s2  ;;  %347 = vrot.lane.b32.xlu0 %v1847_v37, %s1616_s2 }
 0x128   :  { %301 = vrot.lane.b32.xlu1 %v1849_v38, %s1617_s26  ;;  %299 = vrot.lane.b32.xlu0 %v1847_v37, %s1617_s26 }
 0x12c   :  { %361 = vrot.lane.b32.xlu1 %v264_v36, %s1618_s27  ;;  %359 = vrot.lane.b32.xlu0 %v263_v35, %s1618_s27 }
 0x130   :  { %313 = vrot.lane.b32.xlu1 %v264_v36, %s1619_s28  ;;  %311 = vrot.lane.b32.xlu0 %v263_v35, %s1619_s28 }
 0x134   :  { %365 = vrot.lane.b32.xlu1 %v1849_v38, %s1618_s27  ;;  %363 = vrot.lane.b32.xlu0 %v1847_v37, %s1618_s27 }
 0x138   :  { %317 = vrot.lane.b32.xlu1 %v1849_v38, %s1619_s28  ;;  %315 = vrot.lane.b32.xlu0 %v1847_v37, %s1619_s28 }
 0x13c   :  { %377 = vrot.lane.b32.xlu1 %v264_v36, %s1620_s29  ;;  %375 = vrot.lane.b32.xlu0 %v263_v35, %s1620_s29 }
 0x140   :  { %329 = vrot.lane.b32.xlu1 %v264_v36, %s1621_s30  ;;  %327 = vrot.lane.b32.xlu0 %v263_v35, %s1621_s30 }
 0x144   :  { %381 = vrot.lane.b32.xlu1 %v1849_v38, %s1620_s29  ;;  %379 = vrot.lane.b32.xlu0 %v1847_v37, %s1620_s29 }
 0x148   :  { %333 = vrot.lane.b32.xlu1 %v1849_v38, %s1621_s30  ;;  %331 = vrot.lane.b32.xlu0 %v1847_v37, %s1621_s30 }
 0x14c   :  { %393 = vrot.lane.b32.xlu1 %v264_v36, %s1622_s13  ;;  %391 = vrot.lane.b32.xlu0 %v263_v35, %s1622_s13 }
 0x150   :  { %397 = vrot.lane.b32.xlu1 %v1849_v38, %s1622_s13  ;;  %395 = vrot.lane.b32.xlu0 %v1847_v37, %s1622_s13 }
 0x186   :  { %v284_v45 = vpop.permute.xlu1 %283  ;;  %v280_v46 = vpop.permute.xlu0 %279 }
 0x187   :  { %v291_v51 = vmul.f32 %v1911_v47, %v280_v46  ;;  %v293_v58 = vmul.f32 %v1911_v47, %v284_v45 }
 0x18a   :  { %v286_v48 = vpop.permute.xlu1 %285  ;;  %v282_v50 = vpop.permute.xlu0 %281 }
 0x18b   :  { %v292_v52 = vmul.f32 %v1911_v47, %v282_v50  ;;  %v294_v54 = vmul.f32 %v1911_v47, %v286_v48  ;;  %v1956_v48 = vld [vmem:[%s2177_s8 + $0x7] ss:$0 sm:$0xff] }
 0x18d   :  { %v1468_v55 = vpack.c.bf16 %v292_v52, %v291_v51  ;;  %v1472_v62 = vpack.c.bf16 %v294_v54, %v293_v58 }
 0x18e   :  { %v346_v56 = vpop.permute.xlu1 %345  ;;  %v344_v57 = vpop.permute.xlu0 %343 }
 0x18f   :  { %v356_v59 = vmul.f32 %v1918_v53, %v346_v56  ;;  %v355_v60 = vmul.f32 %v1918_v53, %v344_v57  ;;  %1469 = vmatpush3.bf16.msra.mxu0 %v1468_v55  ;;  %v1963_v56 = vld [vmem:[%s2177_s8 + $0x3] ss:$0 sm:$0xff] }
 0x190   :  { %1471 = vmatprep.subr.bf16.mxu0 %v1470_v41 }
 0x191   :  { %v1474_v1 = vpack.c.bf16 %v356_v59, %v355_v60 }
 0x192   :  { %v298_v2 = vpop.permute.xlu1 %297  ;;  %v296_v3 = vpop.permute.xlu0 %295 }
 0x193   :  { %v308_v5 = vmul.f32 %v1927_v61, %v298_v2  ;;  %v307_v8 = vmul.f32 %v1927_v61, %v296_v3  ;;  %1473 = vmatpush3.bf16.msra.mxu0 %v1472_v62 }
 0x194   :  { %1475 = vmatprep.subr.bf16.mxu0 %v1474_v1 }
 0x195   :  { %v1476_v9 = vpack.c.bf16 %v308_v5, %v307_v8 }
 0x196   :  { %v350_v14 = vpop.permute.xlu1 %349  ;;  %v348_v15 = vpop.permute.xlu0 %347 }
 0x197   :  { %v358_v16 = vmul.f32 %v1918_v53, %v350_v14  ;;  %v357_v10 = vmul.f32 %v1918_v53, %v348_v15  ;;  %1477 = vmatpush3.bf16.msra.mxu0 %v1476_v9 }
 0x199   :  { %v1478_v11 = vpack.c.bf16 %v358_v16, %v357_v10 }
 0x19a   :  { %v302_v12 = vpop.permute.xlu1 %301  ;;  %v300_v13 = vpop.permute.xlu0 %299 }
 0x19b   :  { %v310_v18 = vmul.f32 %v1927_v61, %v302_v12  ;;  %v309_v19 = vmul.f32 %v1927_v61, %v300_v13  ;;  %1479 = vmatprep.subr.bf16.mxu0 %v1478_v11  ;;  %v1974_v11 = vld [vmem:[%s2177_s8 + $0x8] ss:$0 sm:$0xff] }
 0x19d   :  { %v1480_v21 = vpack.c.bf16 %v310_v18, %v309_v19 }
 0x19e   :  { %v362_v22 = vpop.permute.xlu1 %361  ;;  %v360_v23 = vpop.permute.xlu0 %359 }
 0x19f   :  { %v372_v25 = vmul.f32 %v1938_v20, %v362_v22  ;;  %v371_v27 = vmul.f32 %v1938_v20, %v360_v23  ;;  %1481 = vmatpush3.bf16.msra.mxu0 %v1480_v21  ;;  %v267_v22 = vld [vmem:[%s2176_s5] sm:$0xff] }
 0x1a0   :  { %v271_v23 = vld [vmem:[%s2176_s5 + $0x20] sm:$0xff] }
 0x1a1   :  { %v1482_v29 = vpack.c.bf16 %v372_v25, %v371_v27 }
 0x1a2   :  { %v314_v30 = vpop.permute.xlu1 %313  ;;  %v312_v31 = vpop.permute.xlu0 %311 }
 0x1a3   :  { %v324_v32 = vmul.f32 %v1945_v28, %v314_v30  ;;  %v323_v34 = vmul.f32 %v1945_v28, %v312_v31  ;;  %1483 = vmatprep.subr.bf16.mxu0 %v1482_v29 }
 0x1a5   :  { %v1484_v35 = vpack.c.bf16 %v324_v32, %v323_v34  ;;  %v270_v32 = vld [vmem:[%s2176_s5 + $0x18] sm:$0xff] }
 0x1a6   :  { %v366_v36 = vpop.permute.xlu1 %365  ;;  %v364_v37 = vpop.permute.xlu0 %363  ;;  %v274_v34 = vld [vmem:[%s2176_s5 + $0x38] sm:$0xff] }
 0x1a7   :  { %v374_v38 = vmul.f32 %v1938_v20, %v366_v36  ;;  %v373_v40 = vmul.f32 %v1938_v20, %v364_v37  ;;  %1485 = vmatpush3.bf16.msra.mxu0 %v1484_v35  ;;  %v273_v36 = vld [vmem:[%s2176_s5 + $0x30] sm:$0xff]  ;;  %v272_v37 = vld [vmem:[%s2176_s5 + $0x28] sm:$0xff] }
 0x1a9   :  { %v1486_v41 = vpack.c.bf16 %v374_v38, %v373_v40  ;;  %v277_v38 = vld [vmem:[%s2176_s5 + $0x50] sm:$0xff]  ;;  %v275_v40 = vld [vmem:[%s2176_s5 + $0x40] sm:$0xff] }
 0x1aa   :  { %v318_v42 = vpop.permute.xlu1 %317  ;;  %v316_v43 = vpop.permute.xlu0 %315 }
 0x1ab   :  { %v326_v45 = vmul.f32 %v1945_v28, %v318_v42  ;;  %v325_v46 = vmul.f32 %v1945_v28, %v316_v43  ;;  %1487 = vmatprep.subr.bf16.mxu0 %v1486_v41  ;;  %v276_v41 = vld [vmem:[%s2176_s5 + $0x48] sm:$0xff]  ;;  %v278_v42 = vld [vmem:[%s2176_s5 + $0x58] sm:$0xff] }
 0x1ad   :  { %v1488_v50 = vpack.c.bf16 %v326_v45, %v325_v46 }
 0x1ae   :  { %v378_v51 = vpop.permute.xlu1 %377  ;;  %v376_v52 = vpop.permute.xlu0 %375 }
 0x1af   :  { %v388_v54 = vmul.f32 %v1956_v48, %v378_v51  ;;  %v387_v55 = vmul.f32 %v1956_v48, %v376_v52  ;;  %1489 = vmatpush3.bf16.msra.mxu0 %v1488_v50 }
 0x1b1   :  { %v1490_v57 = vpack.c.bf16 %v388_v54, %v387_v55 }
 0x1b2   :  { %v330_v58 = vpop.permute.xlu1 %329  ;;  %v328_v59 = vpop.permute.xlu0 %327 }
 0x1b3   :  { %v340_v60 = vmul.f32 %v1963_v56, %v330_v58  ;;  %v339_v62 = vmul.f32 %v1963_v56, %v328_v59  ;;  %1491 = vmatprep.subr.bf16.mxu0 %v1490_v57 }
 0x1b5   :  { %v1492_v1 = vpack.c.bf16 %v340_v60, %v339_v62 }
 0x1b6   :  { %v382_v2 = vpop.permute.xlu1 %381  ;;  %v380_v3 = vpop.permute.xlu0 %379 }
 0x1b7   :  { %v390_v5 = vmul.f32 %v1956_v48, %v382_v2  ;;  %v389_v8 = vmul.f32 %v1956_v48, %v380_v3  ;;  %1493 = vmatpush3.bf16.msra.mxu0 %v1492_v1 }
 0x1b9   :  { %v1494_v9 = vpack.c.bf16 %v390_v5, %v389_v8 }
 0x1ba   :  { %v334_v14 = vpop.permute.xlu1 %333  ;;  %v332_v15 = vpop.permute.xlu0 %331 }
 0x1bb   :  { %v342_v16 = vmul.f32 %v1963_v56, %v334_v14  ;;  %v341_v10 = vmul.f32 %v1963_v56, %v332_v15  ;;  %1495 = vmatprep.subr.bf16.mxu0 %v1494_v9 }
 0x1bd   :  { %v1496_v12 = vpack.c.bf16 %v342_v16, %v341_v10 }
 0x1be   :  { %v394_v13 = vpop.permute.xlu1 %393  ;;  %v392_v18 = vpop.permute.xlu0 %391 }
 0x1bf   :  { %v404_v19 = vmul.f32 %v1974_v11, %v394_v13  ;;  %v403_v21 = vmul.f32 %v1974_v11, %v392_v18  ;;  %1497 = vmatpush3.bf16.msra.mxu0 %v1496_v12 }
 0x1c0   :  { %1530 = vmatprep.subr.bf16.mxu0 %v1612_v0 }
 0x1c1   :  { %v1498_v25 = vpack.c.bf16 %v404_v19, %v403_v21 }
 0x1c2   :  { %v398_v27 = vpop.permute.xlu1 %397  ;;  %v396_v29 = vpop.permute.xlu0 %395  ;;  %485 = vmatmul.mubr.f32.vlgmr.msra.gmra.mrb[2].mxu0 %v267_v22 }
 0x1c3   :  { %v406_v30 = vmul.f32 %v1974_v11, %v398_v27  ;;  %v405_v31 = vmul.f32 %v1974_v11, %v396_v29  ;;  %1499 = vmatprep.subr.bf16.mxu1 %v1498_v25  ;;  %489 = vmatprep.mubr.f32.mxu0 %v271_v23 }
 0x1c4   :  { %1501 = vmatpush3.bf16.msra.mxu1 %v1498_v25  ;;  %1532 = vmatpush3.bf16.msra.mxu0 %v1690_v4 }
 0x1c5   :  { %v1502_v35 = vpack.c.bf16 %v406_v30, %v405_v31  ;;  %1533 = vmatprep.subr.bf16.mxu0 %v1612_v0 }
 0x1c6   :  { %490 = vmatmul.mubr.f32.gmra.mrb[4].mxu0 %v270_v32 }
 0x1c7   :  { %1503 = vmatprep.subr.bf16.mxu1 %v1502_v35  ;;  %494 = vmatprep.mubr.f32.mxu0 %v274_v34 }
 0x1c8   :  { %1505 = vmatpush3.bf16.msra.mxu1 %v1502_v35  ;;  %1535 = vmatpush3.bf16.msra.mxu0 %v1701_v7 }
 0x1c9   :  { %1506 = vmatprep.subr.bf16.mxu1 %v1612_v0  ;;  %1536 = vmatprep.subr.bf16.mxu0 %v1612_v0 }
 0x1ca   :  { %495 = vmatmul.mubr.f32.gmra.mrb[6].mxu0 %v273_v36 }
 0x1cb   :  { %1330 = vmatmul.mubr.msk.f32.vlgmr.msra.gmra.mrb[2].mxu1 %vm407_vm1, %v272_v37  ;;  %499 = vmatprep.mubr.f32.mxu0 %v277_v38 }
 0x1cc   :  { %1332 = vmatprep.mubr.msk.f32.mxu1 %vm407_vm1, %v275_v40  ;;  %1508 = vmatpush3.bf16.msra.mxu1 %v1690_v4 }
 0x1cd   :  { %1509 = vmatprep.subr.bf16.mxu1 %v1612_v0  ;;  %1538 = vmatpush3.bf16.msra.mxu0 %v1739_v17 }
 0x1ce   :  { %500 = vmatmul.mubr.f32.gmra.mrb[8].mxu0 %v276_v41  ;;  %1539 = vmatprep.subr.bf16.mxu0 %v1612_v0 }
 0x1cf   :  { %1333 = vmatmul.mubr.msk.f32.gmra.mrb[4].mxu1 %vm407_vm1, %v278_v42  ;;  %1402 = vmatprep.mubr.msk.f32.mxu0 %vm1613_vm0, %v1614_v6 }
 0x1d0   :  { %1511 = vmatpush3.bf16.msra.mxu1 %v1701_v7  ;;  %1367 = vmatprep.mubr.msk.f32.mxu1 %vm1613_vm0, %v1614_v6 }
 0x1d1   :  { %1512 = vmatprep.subr.bf16.mxu1 %v1612_v0  ;;  %1541 = vmatpush3.bf16.msra.mxu0 %v1759_v26 }
 0x1d2   :  { %1542 = vmatprep.subr.bf16.mxu0 %v1612_v0 }
 0x1d4   :  { %1514 = vmatpush3.bf16.msra.mxu1 %v1739_v17 }
 0x1d5   :  { %1515 = vmatprep.subr.bf16.mxu1 %v1612_v0  ;;  %1544 = vmatpush3.bf16.msra.mxu0 %v1773_v33 }
 0x1d6   :  { %1545 = vmatprep.subr.bf16.mxu0 %v1612_v0 }
 0x1d8   :  { %1517 = vmatpush3.bf16.msra.mxu1 %v1759_v26 }
 0x1d9   :  { %1518 = vmatprep.subr.bf16.mxu1 %v1612_v0  ;;  %1547 = vmatpush3.bf16.msra.mxu0 %v1785_v39 }
 0x1da   :  { %1548 = vmatprep.subr.bf16.mxu0 %v1612_v0 }
 0x1dc   :  { %1520 = vmatpush3.bf16.msra.mxu1 %v1773_v33 }
 0x1dd   :  { %1521 = vmatprep.subr.bf16.mxu1 %v1612_v0  ;;  %1550 = vmatpush3.bf16.msra.mxu0 %v1797_v44 }
 0x1de   :  { %1551 = vmatprep.subr.bf16.mxu0 %v1612_v0 }
 0x1e0   :  { %1523 = vmatpush3.bf16.msra.mxu1 %v1785_v39 }
 0x1e1   :  { %1524 = vmatprep.subr.bf16.mxu1 %v1612_v0  ;;  %1553 = vmatpush3.bf16.msra.mxu0 %v1809_v49 }
 0x1e4   :  { %1526 = vmatpush3.bf16.msra.mxu1 %v1797_v44 }
 0x1e5   :  { %1527 = vmatprep.subr.bf16.mxu1 %v1612_v0 }
 0x1e8   :  { %1529 = vmatpush3.bf16.msra.mxu1 %v1809_v49 }
 0x295   :  { %v1152_v4 = vpop.f32.mrb[2].mxu0 }
 0x296   :  { %v1153_v6 = vpop.f32.mrb[3].mxu0 }
 0x297   :  { %v1154_v7 = vadd.f32 %v1153_v6, %v1152_v4 }
 0x299   :  { %v1155_v17 = vpop.f32.mrb[4].mxu0 }
 0x29a   :  { %v1156_v26 = vpop.f32.mrb[5].mxu0 }
 0x29b   :  { %v1157_v33 = vadd.f32 %v1156_v26, %v1155_v17  ;;  %v590_v17 = vld [vmem:[%s2178_s3] sm:$0xff] }
 0x29d   :  { %v1158_v43 = vpop.f32.mrb[6].mxu0 }
 0x29e   :  { %v1159_v45 = vpop.f32.mrb[7].mxu0  ;;  %v1331_v46 = vpop.f32.mrb[2].mxu1 }
 0x29f   :  { %v1160_v39 = vadd.f32 %v1159_v45, %v1158_v43  ;;  %v577_v50 = vadd.f32 %v1331_v46, %v1157_v33  ;;  %v571_v51 = vpop.f32.mrb[3].mxu1  ;;  %v591_v33 = vld [vmem:[%s2178_s3 + $0x8] sm:$0xff]  ;;  %v592_v43 = vld [vmem:[%s2178_s3 + $0x10] sm:$0xff]  ;;  %v593_v45 = vld [vmem:[%s2178_s3 + $0x18] sm:$0xff] }
 0x2a0   :  { %v572_v52 = vadd.f32 %v1154_v7, %v571_v51  ;;  %v594_v46 = vld [vmem:[%s2179_s4] sm:$0xff] }
 0x2a1   :  { %v1161_v54 = vpop.f32.mrb[8].mxu0  ;;  %v608_v55 = vmul.f32 %v577_v50, %v577_v50 }
 0x2a2   :  { %v607_v44 = vmul.f32 %v572_v52, %v572_v52  ;;  %v1162_v57 = vpop.f32.mrb[9].mxu0  ;;  %v1334_v0 = vpop.f32.mrb[4].mxu1  ;;  %v598_v59 = vadd.f32 %v577_v50, %v572_v52 }
 0x2a3   :  { %v1163_v58 = vadd.f32 %v1162_v57, %v1161_v54  ;;  %v581_v49 = vpop.f32.mrb[5].mxu1  ;;  %v596_v54 = vld [vmem:[%s2179_s4 + $0x10] sm:$0xff] }
 0x2a4   :  { %v582_v60 = vadd.f32 %v1160_v39, %v581_v49  ;;  %v611_v1 = vadd.f32 %v608_v55, %v607_v44  ;;  %v597_v55 = vld [vmem:[%s2179_s4 + $0x18] sm:$0xff] }
 0x2a5   :  { %v587_v62 = vadd.f32 %v1334_v0, %v1163_v58 }
 0x2a6   :  { %v599_v2 = vadd.f32 %v598_v59, %v582_v60  ;;  %v609_v3 = vmul.f32 %v582_v60, %v582_v60 }
 0x2a7   :  { %v610_v5 = vmul.f32 %v587_v62, %v587_v62 }
 0x2a8   :  { %v600_v8 = vadd.f32 %v599_v2, %v587_v62  ;;  %v612_v9 = vadd.f32 %v611_v1, %v609_v3 }
 0x2aa   :  { %v601_v14 = vrot.slane %v600_v8, 4  ;;  %v613_v15 = vadd.f32 %v612_v9, %v610_v5 }
 0x2ac   :  { %v602_v16 = vadd.f32 %v601_v14, %v600_v8  ;;  %v614_v10 = vrot.slane %v613_v15, 4  ;;  %v892_v14 = vld [vmem:[%s2180_s6 + $0x8] sm:$0xff] }
 0x2ae   :  { %v603_v12 = vrot.slane %v602_v16, 2  ;;  %v615_v13 = vadd.f32 %v614_v10, %v613_v15  ;;  %v893_v15 = vld [vmem:[%s2180_s6 + $0x10] sm:$0xff]  ;;  %v897_v10 = vld [vmem:[%s2181_s7] sm:$0xff] }
 0x2b0   :  { %v604_v18 = vadd.f32 %v603_v12, %v602_v16  ;;  %v616_v19 = vrot.slane %v615_v13, 2  ;;  %v1623_v16 = vmov 0   ;;  %v898_v12 = vld [vmem:[%s2181_s7 + $0x8] sm:$0xff] }
 0x2b1   :  { %1606 = vset.pattern.permute.xlu0 %v1623_v16  ;;  %1607 = vset.pattern.permute.xlu1 %v1623_v16 }
 0x2b2   :  { %v605_v21 = vrot.slane %v604_v18, 1  ;;  %v617_v22 = vadd.f32 %v616_v19, %v615_v13 }
 0x2b4   :  { %v606_v23 = vadd.f32 %v605_v21, %v604_v18  ;;  %v618_v25 = vrot.slane %v617_v22, 1 }
 0x2b6   :  { %1368 = vmatmul.mubr.f32.vlgmr.msra.gmra.mrb[6].mxu1 %v606_v23  ;;  %v619_v27 = vadd.f32 %v618_v25, %v617_v22 }
 0x2b7   :  { %980 = vmatprep.mubr.f32.mxu1 %v892_v14 }
 0x2b8   :  { %1403 = vmatmul.mubr.f32.vlgmr.msra.gmra.mrb[10].mxu0 %v619_v27 }
 0x2b9   :  { %1415 = vmatprep.mubr.msk.f32.mxu0 %vm909_vm2, %v893_v15 }
 0x389   :  { %v686_v29 = vpop.f32.mrb[6].mxu1 }
 0x38a   :  { %v760_v30 = vmul.f32 0.00048828125, %v686_v29  ;;  %v1369_v31 = vpop.f32.mrb[7].mxu1 }
 0x38b   :  { %v756_v32 = vpop.f32.mrb[10].mxu0 }
 0x38c   :  { %v762_v34 = vmul.f32 %v760_v30, %v760_v30  ;;  %v761_v35 = vmul.f32 0.00048828125, %v756_v32  ;;  %v1404_v36 = vpop.f32.mrb[11].mxu0  ;;  %v767_v40 = vrot.slane %v760_v30, %v1815_v63 }
 0x38e   :  { %v763_v37 = vsub.f32 %v761_v35, %v762_v34  ;;  %v768_v42 = vsub.f32 %v572_v52, %v767_v40  ;;  %v769_v4 = vsub.f32 %v577_v50, %v767_v40  ;;  %v770_v6 = vsub.f32 %v582_v60, %v767_v40  ;;  %v595_v52 = vld [vmem:[%s2179_s4 + $0x8] sm:$0xff] }
 0x38f   :  { %v771_v7 = vsub.f32 %v587_v62, %v767_v40 }
 0x390   :  { %v772_v38 = vadd.f32 1e-05, %v763_v37 }
 0x392   :  { %1610 = vrsqrt.f32 %v772_v38 }
 0x39c   :  { %v1611_v41 = vpop.eup %1610 }
 0x39d   :  { %v777_v26 = vrot.slane %v1611_v41, %v1815_v63 }
 0x39f   :  { %v778_v39 = vmul.f32 %v777_v26, %v768_v42  ;;  %v779_v50 = vmul.f32 %v777_v26, %v769_v4  ;;  %v780_v51 = vmul.f32 %v777_v26, %v770_v6  ;;  %v781_v63 = vmul.f32 %v777_v26, %v771_v7 }
 0x3a1   :  { %v782_v44 = vmul.f32 %v778_v39, %v590_v17  ;;  %v783_v57 = vmul.f32 %v779_v50, %v591_v33  ;;  %v784_v0 = vmul.f32 %v780_v51, %v592_v43  ;;  %v785_v58 = vmul.f32 %v781_v63, %v593_v45 }
 0x3a3   :  { %v786_v49 = vadd.f32 %v782_v44, %v594_v46  ;;  %v787_v59 = vadd.f32 %v783_v57, %v595_v52  ;;  %v788_v60 = vadd.f32 %v784_v0, %v596_v54  ;;  %v789_v62 = vadd.f32 %v785_v58, %v597_v55 }
 0x3a5   :  { %v790_v1 = vmax.f32 %v786_v49, 0.0  ;;  %v791_v2 = vmax.f32 %v787_v59, 0.0  ;;  %v792_v3 = vmax.f32 %v788_v60, 0.0  ;;  %v793_v5 = vmax.f32 %v789_v62, 0.0 }
 0x3a7   :  { %797 = vrot.lane.b32.xlu1 %v791_v2, %s1615_s1  ;;  %795 = vrot.lane.b32.xlu0 %v790_v1, %s1615_s1  ;;  %v1554_v8 = vpack.c.bf16 %v791_v2, %v790_v1  ;;  %v1558_v9 = vpack.c.bf16 %v793_v5, %v792_v3 }
 0x3a9   :  { %1555 = vmatprep.subr.bf16.mxu1 %v1554_v8 }
 0x3ab   :  { %801 = vrot.lane.b32.xlu1 %v793_v5, %s1615_s1  ;;  %799 = vrot.lane.b32.xlu0 %v792_v3, %s1615_s1 }
 0x3af   :  { %845 = vrot.lane.b32.xlu1 %v791_v2, %s1616_s2  ;;  %843 = vrot.lane.b32.xlu0 %v790_v1, %s1616_s2 }
 0x3b3   :  { %809 = vrot.lane.b32.xlu1 %v791_v2, %s1617_s26  ;;  %807 = vrot.lane.b32.xlu0 %v790_v1, %s1617_s26 }
 0x3b7   :  { %849 = vrot.lane.b32.xlu1 %v793_v5, %s1616_s2  ;;  %847 = vrot.lane.b32.xlu0 %v792_v3, %s1616_s2 }
 0x3bb   :  { %813 = vrot.lane.b32.xlu1 %v793_v5, %s1617_s26  ;;  %811 = vrot.lane.b32.xlu0 %v792_v3, %s1617_s26 }
 0x3bf   :  { %857 = vrot.lane.b32.xlu1 %v791_v2, %s1618_s27  ;;  %855 = vrot.lane.b32.xlu0 %v790_v1, %s1618_s27 }
 0x3c3   :  { %821 = vrot.lane.b32.xlu1 %v791_v2, %s1619_s28  ;;  %819 = vrot.lane.b32.xlu0 %v790_v1, %s1619_s28 }
 0x3c7   :  { %861 = vrot.lane.b32.xlu1 %v793_v5, %s1618_s27  ;;  %859 = vrot.lane.b32.xlu0 %v792_v3, %s1618_s27 }
 0x3cb   :  { %825 = vrot.lane.b32.xlu1 %v793_v5, %s1619_s28  ;;  %823 = vrot.lane.b32.xlu0 %v792_v3, %s1619_s28 }
 0x3cf   :  { %869 = vrot.lane.b32.xlu1 %v791_v2, %s1620_s29  ;;  %867 = vrot.lane.b32.xlu0 %v790_v1, %s1620_s29 }
 0x3d3   :  { %833 = vrot.lane.b32.xlu1 %v791_v2, %s1621_s30  ;;  %831 = vrot.lane.b32.xlu0 %v790_v1, %s1621_s30 }
 0x3d7   :  { %873 = vrot.lane.b32.xlu1 %v793_v5, %s1620_s29  ;;  %871 = vrot.lane.b32.xlu0 %v792_v3, %s1620_s29 }
 0x3db   :  { %837 = vrot.lane.b32.xlu1 %v793_v5, %s1621_s30  ;;  %835 = vrot.lane.b32.xlu0 %v792_v3, %s1621_s30 }
 0x3df   :  { %881 = vrot.lane.b32.xlu1 %v791_v2, %s1622_s13  ;;  %879 = vrot.lane.b32.xlu0 %v790_v1, %s1622_s13 }
 0x3e3   :  { %885 = vrot.lane.b32.xlu1 %v793_v5, %s1622_s13  ;;  %883 = vrot.lane.b32.xlu0 %v792_v3, %s1622_s13 }
 0x3e7   :  { %901 = vperm.xlu0 %1606, %v897_v10   ;;  %906 = vperm.xlu1 %1607, %v898_v12  }
 0x419   :  { %v798_v13 = vpop.permute.xlu1 %797  ;;  %v796_v18 = vpop.permute.xlu0 %795 }
 0x41a   :  { %v804_v19 = vmul.f32 %v1911_v47, %v798_v13  ;;  %v803_v21 = vmul.f32 %v1911_v47, %v796_v18 }
 0x41c   :  { %v1556_v22 = vpack.c.bf16 %v804_v19, %v803_v21 }
 0x41d   :  { %v802_v23 = vpop.permute.xlu1 %801  ;;  %v800_v25 = vpop.permute.xlu0 %799 }
 0x41e   :  { %v806_v27 = vmul.f32 %v1911_v47, %v802_v23  ;;  %v805_v29 = vmul.f32 %v1911_v47, %v800_v25  ;;  %1557 = vmatpush3.bf16.msra.mxu1 %v1556_v22 }
 0x41f   :  { %1559 = vmatprep.subr.bf16.mxu1 %v1558_v9 }
 0x420   :  { %v1560_v30 = vpack.c.bf16 %v806_v27, %v805_v29 }
 0x421   :  { %v846_v31 = vpop.permute.xlu1 %845  ;;  %v844_v32 = vpop.permute.xlu0 %843 }
 0x422   :  { %v852_v34 = vmul.f32 %v1918_v53, %v846_v31  ;;  %v851_v35 = vmul.f32 %v1918_v53, %v844_v32  ;;  %1561 = vmatpush3.bf16.msra.mxu1 %v1560_v30 }
 0x424   :  { %v1562_v36 = vpack.c.bf16 %v852_v34, %v851_v35 }
 0x425   :  { %v810_v37 = vpop.permute.xlu1 %809  ;;  %v808_v38 = vpop.permute.xlu0 %807 }
 0x426   :  { %v816_v40 = vmul.f32 %v1927_v61, %v810_v37  ;;  %v815_v41 = vmul.f32 %v1927_v61, %v808_v38  ;;  %1563 = vmatprep.subr.bf16.mxu1 %v1562_v36  ;;  %v895_v36 = vld [vmem:[%s2180_s6 + $0x20] sm:$0xff] }
 0x428   :  { %v1564_v42 = vpack.c.bf16 %v816_v40, %v815_v41 }
 0x429   :  { %v850_v47 = vpop.permute.xlu1 %849  ;;  %v848_v4 = vpop.permute.xlu0 %847 }
 0x42a   :  { %v854_v6 = vmul.f32 %v1918_v53, %v850_v47  ;;  %v853_v7 = vmul.f32 %v1918_v53, %v848_v4  ;;  %1565 = vmatpush3.bf16.msra.mxu1 %v1564_v42  ;;  %v894_v42 = vld [vmem:[%s2180_s6 + $0x18] sm:$0xff]  ;;  %v794_v4 = vmul.f32 0.25, %v1755_v24 }
 0x42c   :  { %v1566_v17 = vpack.c.bf16 %v854_v6, %v853_v7  ;;  %v896_v6 = vld [vmem:[%s2180_s6 + $0x28] sm:$0xff] }
 0x42d   :  { %v814_v26 = vpop.permute.xlu1 %813  ;;  %v812_v33 = vpop.permute.xlu0 %811 }
 0x42e   :  { %v818_v43 = vmul.f32 %v1927_v61, %v814_v26  ;;  %v817_v45 = vmul.f32 %v1927_v61, %v812_v33  ;;  %1567 = vmatprep.subr.bf16.mxu1 %v1566_v17 }
 0x430   :  { %v1568_v46 = vpack.c.bf16 %v818_v43, %v817_v45 }
 0x431   :  { %v858_v39 = vpop.permute.xlu1 %857  ;;  %v856_v50 = vpop.permute.xlu0 %855 }
 0x432   :  { %v864_v51 = vmul.f32 %v1938_v20, %v858_v39  ;;  %v863_v63 = vmul.f32 %v1938_v20, %v856_v50  ;;  %1569 = vmatpush3.bf16.msra.mxu1 %v1568_v46 }
 0x434   :  { %v1570_v52 = vpack.c.bf16 %v864_v51, %v863_v63 }
 0x435   :  { %v822_v54 = vpop.permute.xlu1 %821  ;;  %v820_v53 = vpop.permute.xlu0 %819 }
 0x436   :  { %v828_v55 = vmul.f32 %v1945_v28, %v822_v54  ;;  %v827_v44 = vmul.f32 %v1945_v28, %v820_v53  ;;  %1571 = vmatprep.subr.bf16.mxu1 %v1570_v52 }
 0x438   :  { %v1572_v57 = vpack.c.bf16 %v828_v55, %v827_v44 }
 0x439   :  { %v862_v0 = vpop.permute.xlu1 %861  ;;  %v860_v61 = vpop.permute.xlu0 %859 }
 0x43a   :  { %v866_v58 = vmul.f32 %v1938_v20, %v862_v0  ;;  %v865_v49 = vmul.f32 %v1938_v20, %v860_v61  ;;  %1573 = vmatpush3.bf16.msra.mxu1 %v1572_v57 }
 0x43c   :  { %v1574_v59 = vpack.c.bf16 %v866_v58, %v865_v49 }
 0x43d   :  { %v826_v60 = vpop.permute.xlu1 %825  ;;  %v824_v62 = vpop.permute.xlu0 %823 }
 0x43e   :  { %v830_v1 = vmul.f32 %v1945_v28, %v826_v60  ;;  %v829_v2 = vmul.f32 %v1945_v28, %v824_v62  ;;  %1575 = vmatprep.subr.bf16.mxu1 %v1574_v59 }
 0x440   :  { %v1576_v3 = vpack.c.bf16 %v830_v1, %v829_v2 }
 0x441   :  { %v870_v5 = vpop.permute.xlu1 %869  ;;  %v868_v8 = vpop.permute.xlu0 %867 }
 0x442   :  { %v876_v9 = vmul.f32 %v1956_v48, %v870_v5  ;;  %v875_v14 = vmul.f32 %v1956_v48, %v868_v8  ;;  %1577 = vmatpush3.bf16.msra.mxu1 %v1576_v3 }
 0x444   :  { %v1578_v15 = vpack.c.bf16 %v876_v9, %v875_v14 }
 0x445   :  { %v834_v16 = vpop.permute.xlu1 %833  ;;  %v832_v20 = vpop.permute.xlu0 %831 }
 0x446   :  { %v840_v10 = vmul.f32 %v1963_v56, %v834_v16  ;;  %v839_v12 = vmul.f32 %v1963_v56, %v832_v20  ;;  %1579 = vmatprep.subr.bf16.mxu1 %v1578_v15 }
 0x448   :  { %v1580_v13 = vpack.c.bf16 %v840_v10, %v839_v12 }
 0x449   :  { %v874_v18 = vpop.permute.xlu1 %873  ;;  %v872_v28 = vpop.permute.xlu0 %871 }
 0x44a   :  { %v878_v19 = vmul.f32 %v1956_v48, %v874_v18  ;;  %v877_v21 = vmul.f32 %v1956_v48, %v872_v28  ;;  %1581 = vmatpush3.bf16.msra.mxu1 %v1580_v13  ;;  %v891_v48 = vld [vmem:[%s2180_s6] sm:$0xff] }
 0x44c   :  { %v1582_v22 = vpack.c.bf16 %v878_v19, %v877_v21 }
 0x44d   :  { %v838_v23 = vpop.permute.xlu1 %837  ;;  %v836_v25 = vpop.permute.xlu0 %835 }
 0x44e   :  { %v842_v27 = vmul.f32 %v1963_v56, %v838_v23  ;;  %v841_v29 = vmul.f32 %v1963_v56, %v836_v25  ;;  %1583 = vmatprep.subr.bf16.mxu1 %v1582_v22 }
 0x450   :  { %v1584_v30 = vpack.c.bf16 %v842_v27, %v841_v29 }
 0x451   :  { %v882_v31 = vpop.permute.xlu1 %881  ;;  %v880_v32 = vpop.permute.xlu0 %879 }
 0x452   :  { %v888_v34 = vmul.f32 %v1974_v11, %v882_v31  ;;  %v887_v35 = vmul.f32 %v1974_v11, %v880_v32  ;;  %1585 = vmatpush3.bf16.msra.mxu1 %v1584_v30 }
 0x454   :  { %v1586_v37 = vpack.c.bf16 %v888_v34, %v887_v35 }
 0x455   :  { %v886_v38 = vpop.permute.xlu1 %885  ;;  %v884_v56 = vpop.permute.xlu0 %883  ;;  %981 = vmatmul.mubr.f32.vlgmr.msra.gmra.mrb[8].mxu1 %v891_v48 }
 0x456   :  { %v890_v40 = vmul.f32 %v1974_v11, %v886_v38  ;;  %v889_v41 = vmul.f32 %v1974_v11, %v884_v56  ;;  %1587 = vmatprep.subr.bf16.mxu0 %v1586_v37  ;;  %985 = vmatprep.mubr.f32.mxu1 %v895_v36 }
 0x457   :  { %1589 = vmatpush3.bf16.msra.mxu0 %v1586_v37 }
 0x458   :  { %v1590_v47 = vpack.c.bf16 %v890_v40, %v889_v41 }
 0x459   :  { %986 = vmatmul.mubr.f32.gmra.mrb[10].mxu1 %v894_v42 }
 0x45a   :  { %1591 = vmatprep.subr.bf16.mxu0 %v1590_v47 }
 0x45b   :  { %1593 = vmatpush3.bf16.msra.mxu0 %v1590_v47 }
 0x45c   :  { %1413 = vmatprep.subr.mxu0 %v794_v4 }
 0x45f   :  { %1414 = vmatpush3.msra.mxu0 %v794_v4 }
 0x460   :  { %1416 = vmatmul.mubr.msk.f32.vlgmr.msra.gmra.mrb[12].mxu0 %vm909_vm2, %v896_v6 }
 0x466   :  { %v907_v43 = vpop.permute.xlu1 %906  ;;  %v902_v46 = vpop.permute.xlu0 %901 }
 0x528   :  { %v1238_v11 = vpop.f32.mrb[8].mxu1 }
 0x529   :  { %v1239_v7 = vpop.f32.mrb[9].mxu1 }
 0x52a   :  { %v1240_v17 = vadd.f32 %v1239_v7, %v1238_v11 }
 0x52c   :  { %v1241_v26 = vpop.f32.mrb[10].mxu1  ;;  %v983_v39 = vadd.f32 %v1240_v17, %v902_v46 }
 0x52d   :  { %v1242_v33 = vpop.f32.mrb[11].mxu1 }
 0x52e   :  { %v1243_v45 = vadd.f32 %v1242_v33, %v1241_v26 }
 0x530   :  { %v988_v24 = vadd.f32 %v1243_v45, %v907_v43 }
 0x533   :  { %v1417_v50 = vpop.f32.mrb[12].mxu0 }
 0x534   :  { %v1063_v51 = vadd.f32 %v1417_v50, %v988_v24  ;;  %v1057_v63 = vpop.f32.mrb[13].mxu0 }
 0x535   :  { %v1058_v52 = vadd.f32 %v1057_v63, %v983_v39 }
 0x536   :  { %1067 = vst [vmem:[%s2182_s10 + $0x8] sm:$0xff] %v1063_v51 }
 0x537   :  { %1066 = vst [vmem:[%s2182_s10] sm:$0xff] %v1058_v52 }

</bundles_post_ra>
